<compile_context>
chip_gen: v6e
topology: v6e:2x2x1
jax: 0.10.0
libtpu: 0.0.40
codegen_flags: <defaults>
</compile_context>

<pallas_src>
import jax
import jax.numpy as jnp
from jax import lax
from jax.experimental import pallas as pl
from jax.experimental.pallas import tpu as pltpu


# ---- parameter-slab layout (rows x lanes of a (128, 128) f32 buffer) -------
#   rows   0:4   cols 0:25  -> l1 weight  (4, 25)
#   row    4     cols 0:25  -> l1 bias
#   rows   8:33  cols 0:50  -> l2 weight  (25, 50)
#   row    33    cols 0:50  -> l2 bias
#   rows  40:90  cols 0:27  -> fused head weight  [actor_lin1 | l3]  (50, 27)
#   row    90    cols 0:27  -> fused head bias
#   rows  96:121 cols 0:1   -> critic_lin1 weight (25, 1)
#   row   121    cols 0:1   -> critic_lin1 bias
SLAB_ROWS = 128
SLAB_COLS = 128


def actor_critic_kernel(x_ref, p_ref, out_ref):
    x = x_ref[...]                                        # (B, 4)

    # F.normalize(x, dim=0): per-column L2 normalization, eps = 1e-12.
    # x / max(||x||, eps)  ==  x * rsqrt(max(sum(x^2), eps^2))
    sumsq = jnp.sum(x * x, axis=0, keepdims=True)
    x = x * lax.rsqrt(jnp.maximum(sumsq, 1e-24))

    # y = relu(l1(x))          4 -> 25
    w1 = p_ref[0:4, 0:25]
    b1 = p_ref[4:5, 0:25]
    y = jnp.maximum(
        jnp.dot(x, w1, preferred_element_type=jnp.float32) + b1, 0.0)

    # y = relu(l2(y))          25 -> 50
    w2 = p_ref[8:33, 0:50]
    b2 = p_ref[33:34, 0:50]
    y = jnp.maximum(
        jnp.dot(y, w2, preferred_element_type=jnp.float32) + b2, 0.0)

    # fused head: [actor_lin1 | l3]   50 -> 27   (y.detach() is a fwd no-op)
    wh = p_ref[40:90, 0:27]
    bh = p_ref[90:91, 0:27]
    h = jnp.dot(y, wh, preferred_element_type=jnp.float32) + bh

    # actor = log_softmax(head[:, 0:2], dim=0)   (reduction over batch axis)
    logits = h[:, 0:2]
    m = jnp.max(logits, axis=0, keepdims=True)
    z = logits - m
    lse = jnp.log(jnp.sum(jnp.exp(z), axis=0, keepdims=True))
    actor = z - lse

    # c = relu(head[:, 2:27]); critic = tanh(critic_lin1(c))   25 -> 1
    c = jnp.maximum(h[:, 2:27], 0.0)
    wc = p_ref[96:121, 0:1]
    bc = p_ref[121:122, 0:1]
    critic = jnp.tanh(
        jnp.dot(c, wc, preferred_element_type=jnp.float32) + bc)

    # Single lane-padded output buffer: actor in cols 0:2, critic in col 2.
    out_ref[...] = jnp.zeros_like(out_ref)
    out_ref[:, 0:2] = actor
    out_ref[:, 2:3] = critic


def init_params(key):
    """Deterministic PyTorch-style (uniform +/- 1/sqrt(fan_in)) initialization.
    Weights are stored already transposed to (in, out); biases as (1, out)."""
    dims = [("l1", 4, 25), ("l2", 25, 50), ("actor_lin1", 50, 2),
            ("l3", 50, 25), ("critic_lin1", 25, 1)]
    params = {}
    for name, fan_in, fan_out in dims:
        key, kw, kb = jax.random.split(key, 3)
        bound = 1.0 / jnp.sqrt(float(fan_in))
        params[name + "_w"] = jax.random.uniform(
            kw, (fan_in, fan_out), jnp.float32, -bound, bound)
        params[name + "_b"] = jax.random.uniform(
            kb, (1, fan_out), jnp.float32, -bound, bound)
    return params


def pack_params(p):
    """Pack all weights/biases into one lane-padded (128, 128) f32 slab."""
    slab = jnp.zeros((SLAB_ROWS, SLAB_COLS), jnp.float32)
    slab = slab.at[0:4, 0:25].set(p["l1_w"])
    slab = slab.at[4:5, 0:25].set(p["l1_b"])
    slab = slab.at[8:33, 0:50].set(p["l2_w"])
    slab = slab.at[33:34, 0:50].set(p["l2_b"])
    w_head = jnp.concatenate([p["actor_lin1_w"], p["l3_w"]], axis=1)   # (50,27)
    b_head = jnp.concatenate([p["actor_lin1_b"], p["l3_b"]], axis=1)   # (1,27)
    slab = slab.at[40:90, 0:27].set(w_head)
    slab = slab.at[90:91, 0:27].set(b_head)
    slab = slab.at[96:121, 0:1].set(p["critic_lin1_w"])
    slab = slab.at[121:122, 0:1].set(p["critic_lin1_b"])
    return slab


def actor_critic_forward(x, param_slab):
    B = x.shape[0]
    vmem = pl.BlockSpec(memory_space=pltpu.MemorySpace.VMEM)
    out = pl.pallas_call(
        actor_critic_kernel,
        out_shape=jax.ShapeDtypeStruct((B, SLAB_COLS), jnp.float32),
        in_specs=[vmem, vmem],
        out_specs=vmem,
    )(x, param_slab)
    return out[:, 0:2], out[:, 2:3]


def actor_critic_ref(x, p):
    """Pure-JAX reference mirroring the PyTorch forward exactly."""
    x = x / jnp.maximum(jnp.sqrt(jnp.sum(x * x, axis=0, keepdims=True)), 1e-12)
    y = jax.nn.relu(x @ p["l1_w"] + p["l1_b"])
    y = jax.nn.relu(y @ p["l2_w"] + p["l2_b"])
    actor = jax.nn.log_softmax(y @ p["actor_lin1_w"] + p["actor_lin1_b"], axis=0)
    c = jax.nn.relu(y @ p["l3_w"] + p["l3_b"])
    critic = jnp.tanh(c @ p["critic_lin1_w"] + p["critic_lin1_b"])
    return actor, critic


if __name__ == "__main__":
    key = jax.random.PRNGKey(0)
    key_x, key_p = jax.random.split(key)

    B = 8                                   # small batch of 4-dim CartPole states
    x = jax.random.normal(key_x, (B, 4), dtype=jnp.float32)
    params = init_params(key_p)
    slab = pack_params(params)

    actor, critic = actor_critic_forward(x, slab)
    jax.block_until_ready((actor, critic))

    actor_r, critic_r = actor_critic_ref(x, params)
    assert actor.shape == (B, 2) and critic.shape == (B, 1)
    assert jnp.allclose(actor, actor_r, rtol=1e-5, atol=1e-5)
    assert jnp.allclose(critic, critic_r, rtol=1e-5, atol=1e-5)

    print("KERNEL_OK")
</pallas_src>

<mosaic_0001>
module attributes {stable_mosaic.version = 11 : i64} {
  func.func @actor_critic_kernel(%arg0: memref<8x4xf32, #tpu.memory_space<vmem>>, %arg1: memref<128x128xf32, #tpu.memory_space<vmem>>, %arg2: memref<8x128xf32, #tpu.memory_space<vmem>>) attributes {dimension_semantics = [], scalar_prefetch = 0 : i64, scratch_operands = 0 : i64, tpu.core_type = #tpu.core_type<tc>} {
    %c0 = arith.constant 0 : index
    %c0_0 = arith.constant 0 : index
    %0 = vector.load %arg0[%c0, %c0_0] : memref<8x4xf32, #tpu.memory_space<vmem>>, vector<8x4xf32>
    %1 = arith.mulf %0, %0 : vector<8x4xf32>
    %cst = arith.constant dense<0.000000e+00> : vector<4xf32>
    %2 = vector.multi_reduction <add>, %1, %cst [0] : vector<8x4xf32> to vector<4xf32>
    %3 = vector.shape_cast %2 : vector<4xf32> to vector<1x4xf32>
    %cst_1 = arith.constant 1.000000e-24 : f32
    %4 = vector.broadcast %cst_1 : f32 to vector<1x4xf32>
    %5 = arith.maximumf %3, %4 : vector<1x4xf32>
    %6 = math.rsqrt %5 : vector<1x4xf32>
    %7 = vector.broadcast %6 : vector<1x4xf32> to vector<8x4xf32>
    %8 = arith.mulf %0, %7 : vector<8x4xf32>
    %c0_2 = arith.constant 0 : index
    %c0_3 = arith.constant 0 : index
    %9 = vector.load %arg1[%c0_2, %c0_3] : memref<128x128xf32, #tpu.memory_space<vmem>>, vector<4x25xf32>
    %c4 = arith.constant 4 : index
    %c0_4 = arith.constant 0 : index
    %10 = vector.load %arg1[%c4, %c0_4] : memref<128x128xf32, #tpu.memory_space<vmem>>, vector<1x25xf32>
    %cst_5 = arith.constant dense<0.000000e+00> : vector<8x25xf32>
    %11 = tpu.matmul %8, %9, %cst_5 {dimension_numbers = #tpu.dot_dimension_numbers<[1], [0], [0], [1], [0, 0, 1, 1], [], []>} : vector<8x4xf32>, vector<4x25xf32>, vector<8x25xf32> -> vector<8x25xf32>
    %12 = vector.broadcast %10 : vector<1x25xf32> to vector<8x25xf32>
    %13 = arith.addf %11, %12 : vector<8x25xf32>
    %cst_6 = arith.constant 0.000000e+00 : f32
    %14 = vector.broadcast %cst_6 : f32 to vector<8x25xf32>
    %15 = arith.maximumf %13, %14 : vector<8x25xf32>
    %c8 = arith.constant 8 : index
    %c0_7 = arith.constant 0 : index
    %16 = vector.load %arg1[%c8, %c0_7] : memref<128x128xf32, #tpu.memory_space<vmem>>, vector<25x50xf32>
    %c33 = arith.constant 33 : index
    %c0_8 = arith.constant 0 : index
    %17 = vector.load %arg1[%c33, %c0_8] : memref<128x128xf32, #tpu.memory_space<vmem>>, vector<1x50xf32>
    %cst_9 = arith.constant dense<0.000000e+00> : vector<8x50xf32>
    %18 = tpu.matmul %15, %16, %cst_9 {dimension_numbers = #tpu.dot_dimension_numbers<[1], [0], [0], [1], [0, 0, 1, 1], [], []>} : vector<8x25xf32>, vector<25x50xf32>, vector<8x50xf32> -> vector<8x50xf32>
    %19 = vector.broadcast %17 : vector<1x50xf32> to vector<8x50xf32>
    %20 = arith.addf %18, %19 : vector<8x50xf32>
    %cst_10 = arith.constant 0.000000e+00 : f32
    %21 = vector.broadcast %cst_10 : f32 to vector<8x50xf32>
    %22 = arith.maximumf %20, %21 : vector<8x50xf32>
    %c40 = arith.constant 40 : index
    %c0_11 = arith.constant 0 : index
    %23 = vector.load %arg1[%c40, %c0_11] : memref<128x128xf32, #tpu.memory_space<vmem>>, vector<50x27xf32>
    %c90 = arith.constant 90 : index
    %c0_12 = arith.constant 0 : index
    %24 = vector.load %arg1[%c90, %c0_12] : memref<128x128xf32, #tpu.memory_space<vmem>>, vector<1x27xf32>
    %cst_13 = arith.constant dense<0.000000e+00> : vector<8x27xf32>
    %25 = tpu.matmul %22, %23, %cst_13 {dimension_numbers = #tpu.dot_dimension_numbers<[1], [0], [0], [1], [0, 0, 1, 1], [], []>} : vector<8x50xf32>, vector<50x27xf32>, vector<8x27xf32> -> vector<8x27xf32>
    %26 = vector.broadcast %24 : vector<1x27xf32> to vector<8x27xf32>
    %27 = arith.addf %25, %26 : vector<8x27xf32>
    %28 = vector.extract_strided_slice %27 {offsets = [0, 0], sizes = [8, 2], strides = [1, 1]} : vector<8x27xf32> to vector<8x2xf32>
    %cst_14 = arith.constant dense<0xFF800000> : vector<2xf32>
    %29 = vector.multi_reduction <maximumf>, %28, %cst_14 [0] : vector<8x2xf32> to vector<2xf32>
    %30 = vector.shape_cast %29 : vector<2xf32> to vector<1x2xf32>
    %31 = vector.broadcast %30 : vector<1x2xf32> to vector<8x2xf32>
    %32 = arith.subf %28, %31 : vector<8x2xf32>
    %33 = math.exp %32 : vector<8x2xf32>
    %cst_15 = arith.constant dense<0.000000e+00> : vector<2xf32>
    %34 = vector.multi_reduction <add>, %33, %cst_15 [0] : vector<8x2xf32> to vector<2xf32>
    %35 = vector.shape_cast %34 : vector<2xf32> to vector<1x2xf32>
    %36 = math.log %35 : vector<1x2xf32>
    %37 = vector.broadcast %36 : vector<1x2xf32> to vector<8x2xf32>
    %38 = arith.subf %32, %37 : vector<8x2xf32>
    %39 = vector.extract_strided_slice %27 {offsets = [0, 2], sizes = [8, 25], strides = [1, 1]} : vector<8x27xf32> to vector<8x25xf32>
    %cst_16 = arith.constant 0.000000e+00 : f32
    %40 = vector.broadcast %cst_16 : f32 to vector<8x25xf32>
    %41 = arith.maximumf %39, %40 : vector<8x25xf32>
    %c96 = arith.constant 96 : index
    %c0_17 = arith.constant 0 : index
    %42 = vector.load %arg1[%c96, %c0_17] : memref<128x128xf32, #tpu.memory_space<vmem>>, vector<25x1xf32>
    %c121 = arith.constant 121 : index
    %c0_18 = arith.constant 0 : index
    %43 = vector.load %arg1[%c121, %c0_18] : memref<128x128xf32, #tpu.memory_space<vmem>>, vector<1x1xf32>
    %cst_19 = arith.constant dense<0.000000e+00> : vector<8x1xf32>
    %44 = tpu.matmul %41, %42, %cst_19 {dimension_numbers = #tpu.dot_dimension_numbers<[1], [0], [0], [1], [0, 0, 1, 1], [], []>} : vector<8x25xf32>, vector<25x1xf32>, vector<8x1xf32> -> vector<8x1xf32>
    %45 = vector.broadcast %43 : vector<1x1xf32> to vector<8x1xf32>
    %46 = arith.addf %44, %45 : vector<8x1xf32>
    %47 = math.tanh %46 : vector<8x1xf32>
    %cst_20 = arith.constant 0.000000e+00 : f32
    %48 = vector.broadcast %cst_20 : f32 to vector<8x128xf32>
    %c0_21 = arith.constant 0 : index
    %c0_22 = arith.constant 0 : index
    %49 = vector.load %arg2[%c0_21, %c0_22] : memref<8x128xf32, #tpu.memory_space<vmem>>, vector<8x128xf32>
    tpu.vector_store %arg2[%c0_21, %c0_22], %48 {strides = array<i32>} : memref<8x128xf32, #tpu.memory_space<vmem>>, vector<8x128xf32>,
    %c0_23 = arith.constant 0 : index
    %c0_24 = arith.constant 0 : index
    %50 = vector.load %arg2[%c0_23, %c0_24] : memref<8x128xf32, #tpu.memory_space<vmem>>, vector<8x2xf32>
    tpu.vector_store %arg2[%c0_23, %c0_24], %38 {strides = array<i32>} : memref<8x128xf32, #tpu.memory_space<vmem>>, vector<8x2xf32>,
    %c0_25 = arith.constant 0 : index
    %c2 = arith.constant 2 : index
    %51 = vector.load %arg2[%c0_25, %c2] : memref<8x128xf32, #tpu.memory_space<vmem>>, vector<8x1xf32>
    tpu.vector_store %arg2[%c0_25, %c2], %47 {strides = array<i32>} : memref<8x128xf32, #tpu.memory_space<vmem>>, vector<8x1xf32>,
    return
  }
}

</mosaic_0001>

<bundles_post_ra>
// kernel: tpu_custom_call.1
= control target key start
LH: loop header
LB: loop body
LE: loop exit
PB: predicated region body
PF: predicated region fallthrough
CT: control target
= control target key end

     0   :  { %7 = vsyncpa [#allocation3], 0  ;;  %s636_s0 = inlined_call_operand.vmem [shape: f32[8,4], index: 0, kind: input, shape index: {}]   ;;  %s637_s1 = inlined_call_operand.hbm [shape: f32[128,128], index: 1, kind: input, shape index: {}]   ;;  %s638_s2 = inlined_call_operand.hbm [shape: f32[8,128], index: 2, kind: output, shape index: {}]  }
   0x1   :  { %8 = vsyncpa [#allocation4], 0  ;;  %s570_s9 = smov [#allocation2]  }
   0x2   :  { %s16_s10 = sshll.u32 %s570_s9, 4  ;;  %s17_s10 = int_to_ptr.vmem [resolvable:$true] %s16_s10 }
   0x3   :  { %s534_s11 = scalar_lea.vmem %s17_s10, 2048  ;;  %p539_p1 = scmp.lt.s32.totalorder %s17_s10, %s17_s10 }
   0x4   :  { %p535_p0 = scmp.ne.s32.totalorder %s17_s10, %s534_s11  ;;  %p540_p2 = scmp.lt.s32.totalorder %s534_s11, %s534_s11 }
   0x6   :  { %p541_p3 = por %p540_p2, %p539_p1 }
   0x8   :  { %p542_p4 = pnand %p541_p3, %p535_p0 }
   0xa   :  { %545 = shalt.err (!%p542_p4)
}
   0xb   :  { %s571_s12 = smov 128   ;;  %s572_s13 = smov 8  }
   0xc   :  { %22 = dma.hbm_to_vmem [thread:$0]  %s637_s1, 2048, %s17_s10, [#allocation3], %s571_s12, %s571_s12, %s572_s13  }
   0xd   :  { %566 = dma.done.wait [#allocation3], 2048  }
   0xe   :  { %567 = vsyncadd [#allocation3], 4294965248  ;;  %v573_v0 = vmov 0.0   ;;  %vm574_vm0 = vmmov 0   ;;  %vm48_vm1 = vcmask 1043456   ;;  %vm136_vm2 = vcmask 1040384  }
   0xf   :  { %466 = vmatprep.subr.mxu0 %v573_v0  ;;  %411 = vst [vmem:[#allocation5] sm:$0xff] %v573_v0  ;;  %468 = vmatprep.mubr.msk.f32.mxu0 %vm574_vm0, %v573_v0  ;;  %v39_v1 = vld [vmem:[#allocation2] sm:$0xf]  ;;  %vm28_vm3 = vcmask 31744   ;;  %v125_v15 = vld [vmem:[#allocation2 + $0x18] sm:$0xff]  ;;  %v124_v16 = vld [vmem:[#allocation2 + $0x10] sm:$0xff] }
  0x10   :  { %471 = vmatprep.subr.mxu1 %v573_v0  ;;  %479 = vmatprep.mubr.msk.f32.mxu1 %vm574_vm0, %v573_v0  ;;  %v26_v2 = vld [vmem:[%s636_s0] sm:$0xff]  ;;  %v123_v17 = vld [vmem:[#allocation2 + $0x8] sm:$0xff]  ;;  %v217_v18 = vld [vmem:[#allocation2 + $0x58] sm:$0x3]  ;;  %vm227_vm4 = vcmask 1041408   ;;  %vm132_vm5 = vcmask 203776  }
  0x11   :  { %v126_v3 = vld [vmem:[#allocation2 + $0x20] sm:$0x1]  ;;  %467 = vmatpush3.msk.msra.mxu0 %vm48_vm1, %v39_v1  ;;  %v27_v4 = vmul.f32 %v26_v2, %v26_v2  ;;  %v216_v19 = vld [vmem:[#allocation2 + $0x50] sm:$0xff]  ;;  %v215_v20 = vld [vmem:[#allocation2 + $0x48] sm:$0xff]  ;;  %vm223_vm6 = vcmask 408576   ;;  %vm301_vm7 = vcmask 15360  }
  0x12   :  { %472 = vmatpush3.msk.msra.mxu1 %vm136_vm2, %v126_v3  ;;  %482 = vmatprep.subr.mxu0 %v573_v0  ;;  %v214_v21 = vld [vmem:[#allocation2 + $0x40] sm:$0xff]  ;;  %v213_v27 = vld [vmem:[#allocation2 + $0x38] sm:$0xff]  ;;  %v212_v28 = vld [vmem:[#allocation2 + $0x30] sm:$0xff]  ;;  %s575_s0 = smov 126   ;;  %s576_s17 = smov 2   ;;  %vm417_vm8 = vcmask 23568  }
  0x13   :  { %473 = vmatprep.subr.mxu1 %v573_v0  ;;  %v29_v5 = vsel %vm28_vm3, %v27_v4, 0.0  ;;  %v434_v22 = vld [vmem:[#allocation2 + $0x4] ss:$0 sm:$0xff]  ;;  %v211_v29 = vld [vmem:[#allocation2 + $0x28] sm:$0xff]  ;;  %v437_v30 = vld [vmem:[#allocation2 + $0x21] ss:$0 sm:$0xff] }
  0x14   :  { %v30_v6 = vrot.slane %v29_v5, 4  ;;  %474 = vmatpush3.msra.mxu1 %v125_v15  ;;  %v326_v35 = vld [vmem:[#allocation2 + $0x78] sm:$0x1]  ;;  %v325_v36 = vld [vmem:[#allocation2 + $0x70] sm:$0xff]  ;;  %v324_v37 = vld [vmem:[#allocation2 + $0x68] sm:$0xff]  ;;  %s577_s18 = smov [#allocation5]  }
  0x15   :  { %475 = vmatprep.subr.mxu1 %v573_v0  ;;  %v323_v38 = vld [vmem:[#allocation2 + $0x60] sm:$0xff]  ;;  %v440_v39 = vld [vmem:[#allocation2 + $0x5a] ss:$0 sm:$0xff]  ;;  %v443_v1 = vld [vmem:[#allocation2 + $0x79] ss:$0 sm:$0xff]  ;;  %s425_s19 = sshll.u32 %s577_s18, 4  ;;  %s426_s19 = int_to_ptr.vmem [resolvable:$true] %s425_s19 }
  0x16   :  { %v31_v7 = vadd.f32 %v30_v6, %v29_v5  ;;  %476 = vmatpush3.msra.mxu1 %v124_v16  ;;  %s546_s20 = scalar_lea.vmem %s426_s19, 128  ;;  %p551_p6 = scmp.lt.s32.totalorder %s426_s19, %s426_s19 }
  0x17   :  { %477 = vmatprep.subr.mxu1 %v573_v0  ;;  %p547_p5 = scmp.ne.s32.totalorder %s426_s19, %s546_s20  ;;  %p552_p7 = scmp.lt.s32.totalorder %s546_s20, %s546_s20 }
  0x18   :  { %v32_v8 = vrot.slane %v31_v7, 2  ;;  %478 = vmatpush3.msra.mxu1 %v123_v17 }
  0x19   :  { %499 = vmatprep.subr.mxu1 %v573_v0  ;;  %p553_p8 = por %p552_p7, %p551_p6 }
  0x1a   :  { %v33_v9 = vadd.f32 %v32_v8, %v31_v7 }
  0x1b   :  { %p554_p9 = pnand %p553_p8, %p547_p5 }
  0x1c   :  { %v34_v10 = vrot.slane %v33_v9, 1 }
  0x1e   :  { %v35_v11 = vadd.f32 %v34_v10, %v33_v9 }
  0x20   :  { %v36_v12 = vmax.f32 %v35_v11, 1e-24 }
  0x22   :  { %518 = vrsqrt.f32 %v36_v12 }
  0x2f   :  { %v519_v13 = vpop.eup %518 }
  0x30   :  { %v38_v14 = vmul.f32 %v519_v13, %v26_v2 }
  0x32   :  { %469 = vmatmul.mubr.msk.f32.vlgmr.msra.gmra.mxu0 %vm28_vm3, %v38_v14 }
  0x33   :  { %496 = vmatprep.mubr.msk.f32.mxu0 %vm574_vm0, %v573_v0  ;;  %483 = vmatpush3.msk.msra.mxu0 %vm227_vm4, %v217_v18 }
  0x34   :  { %484 = vmatprep.subr.mxu0 %v573_v0 }
  0x35   :  { %485 = vmatpush3.msra.mxu0 %v216_v19 }
  0x36   :  { %486 = vmatprep.subr.mxu0 %v573_v0 }
  0x37   :  { %487 = vmatpush3.msra.mxu0 %v215_v20 }
  0x38   :  { %488 = vmatprep.subr.mxu0 %v573_v0 }
  0x39   :  { %489 = vmatpush3.msra.mxu0 %v214_v21 }
  0x3a   :  { %490 = vmatprep.subr.mxu0 %v573_v0 }
  0x3b   :  { %491 = vmatpush3.msra.mxu0 %v213_v27 }
  0x3c   :  { %492 = vmatprep.subr.mxu0 %v573_v0 }
  0x3d   :  { %493 = vmatpush3.msra.mxu0 %v212_v28 }
  0x3e   :  { %494 = vmatprep.subr.mxu0 %v573_v0 }
  0x3f   :  { %495 = vmatpush3.msra.mxu0 %v211_v29 }
  0xf2   :  { %v118_v23 = vpop.f32.mrf.mxu0 }
  0xf3   :  { %v119_v24 = vadd.f32 %v434_v22, %v118_v23 }
  0xf4   :  { %v470_v25 = vpop.f32.mrf.mxu0 }
  0xf5   :  { %v122_v26 = vmax.f32 %v119_v24, 0.0 }
  0xf7   :  { %480 = vmatmul.mubr.msk.f32.vlgmr.msra.gmra.mxu1 %vm132_vm5, %v122_v26 }
  0xf8   :  { %507 = vmatprep.mubr.msk.f32.mxu1 %vm574_vm0, %v573_v0  ;;  %500 = vmatpush3.msk.msra.mxu1 %vm136_vm2, %v326_v35 }
  0xf9   :  { %501 = vmatprep.subr.mxu1 %v573_v0 }
  0xfa   :  { %502 = vmatpush3.msra.mxu1 %v325_v36 }
  0xfb   :  { %503 = vmatprep.subr.mxu1 %v573_v0 }
  0xfc   :  { %504 = vmatpush3.msra.mxu1 %v324_v37 }
  0xfd   :  { %505 = vmatprep.subr.mxu1 %v573_v0 }
  0xfe   :  { %506 = vmatpush3.msra.mxu1 %v323_v38 }
 0x1b7   :  { %v206_v31 = vpop.f32.mrf.mxu1 }
 0x1b8   :  { %v207_v32 = vadd.f32 %v437_v30, %v206_v31 }
 0x1b9   :  { %v481_v33 = vpop.f32.mrf.mxu1 }
 0x1ba   :  { %v210_v34 = vmax.f32 %v207_v32, 0.0 }
 0x1bc   :  { %497 = vmatmul.mubr.msk.f32.vlgmr.msra.gmra.mxu0 %vm223_vm6, %v210_v34 }
 0x27c   :  { %v297_v40 = vpop.f32.mrf.mxu0 }
 0x27d   :  { %v298_v41 = vadd.f32 %v440_v39, %v297_v40 }
 0x27e   :  { %v498_v42 = vpop.f32.mrf.mxu0 }
 0x27f   :  { %v302_v43 = vsel %vm301_vm7, %v298_v41, -inf  ;;  %v322_v44 = vmax.f32 %v298_v41, 0.0 }
 0x280   :  { %v303_v45 = vrot.slane %v302_v43, 4 }
 0x281   :  { %333 = vrot.lane.b32.xlu0 %v322_v44, %s575_s0 }
 0x282   :  { %v304_v46 = vmax.f32 %v302_v43, %v303_v45 }
 0x284   :  { %v305_v47 = vrot.slane %v304_v46, 2 }
 0x286   :  { %v306_v48 = vmax.f32 %v304_v46, %v305_v47 }
 0x288   :  { %v307_v49 = vrot.slane %v306_v48, 1 }
 0x28a   :  { %v308_v50 = vmax.f32 %v306_v48, %v307_v49 }
 0x28c   :  { %v309_v51 = vsub.f32 %v298_v41, %v308_v50 }
 0x28e   :  { %v310_v52 = vmul.f32 1.442695, %v309_v51 }
 0x290   :  { %520 = vpow2.f32 %v310_v52 }
 0x29d   :  { %v521_v53 = vpop.eup %520 }
 0x29e   :  { %v312_v54 = vsel %vm301_vm7, %v521_v53, 0.0 }
 0x29f   :  { %v313_v55 = vrot.slane %v312_v54, 4 }
 0x2a1   :  { %v314_v56 = vadd.f32 %v313_v55, %v312_v54 }
 0x2a3   :  { %v315_v57 = vrot.slane %v314_v56, 2 }
 0x2a5   :  { %v316_v58 = vadd.f32 %v315_v57, %v314_v56 }
 0x2a7   :  { %v317_v59 = vrot.slane %v316_v58, 1 }
 0x2a9   :  { %v318_v60 = vadd.f32 %v317_v59, %v316_v58 }
 0x2ab   :  { %522 = vlog2.f32 %v318_v60 }
 0x2b8   :  { %v523_v61 = vpop.eup %522 }
 0x2b9   :  { %v320_v62 = vmul.f32 0.6931472, %v523_v61 }
 0x2bb   :  { %v321_v63 = vsub.f32 %v309_v51, %v320_v62 }
 0x2bd   :  { %412 = vst.msk [vmem:[#allocation5] sm:$0xff] %vm301_vm7, %v321_v63 }
 0x2f3   :  { %v334_v0 = vpop.permute.xlu0 %333 }
 0x2f4   :  { %508 = vmatmul.mubr.msk.f32.vlgmr.msra.gmra.mxu1 %vm132_vm5, %v334_v0 }
 0x3b4   :  { %v406_v2 = vpop.f32.mrf.mxu1 }
 0x3b5   :  { %v407_v3 = vadd.f32 %v443_v1, %v406_v2 }
 0x3b6   :  { %v509_v4 = vpop.f32.mrf.mxu1 }
 0x3b7   :  { %524 = vtanh.f32 %v407_v3 }
 0x3c4   :  { %v525_v5 = vpop.eup %524 }
 0x3c5   :  { %414 = vrot.lane.b32.xlu0 %v525_v5, %s576_s17 }
 0x437   :  { %v415_v6 = vpop.permute.xlu0 %414 }
 0x438   :  { %418 = vst.msk [vmem:[#allocation5] sm:$0xff] %vm417_vm8, %v415_v6 }
 0x439   :  { %557 = shalt.err (!%p554_p9)
}
 0x43a   :  { %428 = dma.vmem_to_hbm [thread:$0]  %s426_s19, 128, %s638_s2, [#allocation4]  }
 0x43b   :  { %568 = dma.done.wait [#allocation4], 128  }
 0x43c   :  { %569 = vsyncadd [#allocation4], 4294967168 }
 0x43d   :  { %432 = vsyncpa [#allocation3], 1 }
 0x43e   :  { %433 = vsyncpa [#allocation4], 1 }

</bundles_post_ra>
